<compile_context>
chip_gen: v7x
topology: tpu7x:2x2x1
jax: 0.10.0
libtpu: 0.0.40
codegen_flags: <defaults>
</compile_context>

<pallas_src>
import functools
import math

import jax
import jax.numpy as jnp
from jax import lax
from jax.experimental import pallas as pl
from jax.experimental.pallas import tpu as pltpu

# Contract dim 1 of the activations with dim 1 of a PyTorch-layout [out, in] weight: x @ W^T.
_DN_XWT = (((1,), (1,)), ((), ()))
# Regular row-major matmul (probs @ V).
_DN_PV = (((1,), (0,)), ((), ()))


def qkv_proj_kernel(x_ref, wq_ref, wk_ref, wv_ref, bq_ref, bk_ref, bv_ref,
                    q_ref, k_ref, v_ref):
    x = x_ref[...]
    q = lax.dot_general(x, wq_ref[...], _DN_XWT, preferred_element_type=jnp.float32)
    k = lax.dot_general(x, wk_ref[...], _DN_XWT, preferred_element_type=jnp.float32)
    v = lax.dot_general(x, wv_ref[...], _DN_XWT, preferred_element_type=jnp.float32)
    q_ref[...] = (q + bq_ref[...].astype(jnp.float32)).astype(q_ref.dtype)
    k_ref[...] = (k + bk_ref[...].astype(jnp.float32)).astype(k_ref.dtype)
    v_ref[...] = (v + bv_ref[...].astype(jnp.float32)).astype(v_ref.dtype)


def attention_kernel(q_ref, k_ref, v_ref, mask_ref, o_ref, *, scale):
    q = q_ref[0, 0]                              # (S, dh)
    k = k_ref[0, 0]                              # (S, dh)
    v = v_ref[0, 0]                              # (S, dh)
    mask = mask_ref[0].astype(jnp.float32)       # (1, S) additive mask over key positions

    s = lax.dot_general(q, k, _DN_XWT, preferred_element_type=jnp.float32)   # (S, S) = q @ k^T
    s = s * scale + mask
    m = jnp.max(s, axis=-1, keepdims=True)
    p = jnp.exp(s - m)
    l = jnp.sum(p, axis=-1, keepdims=True)
    # Attention-probs dropout is inference-mode identity; head_mask=None default path.
    # TODO(synk): training-mode dropout via pltpu.prng_* if needed.
    ctx = lax.dot_general(p.astype(v.dtype), v, _DN_PV, preferred_element_type=jnp.float32)
    ctx = ctx / l
    o_ref[0, 0] = ctx.astype(o_ref.dtype)


def self_output_kernel(x_ref, res_ref, w_ref, b_ref, gamma_ref, beta_ref, o_ref, *, eps):
    y = lax.dot_general(x_ref[...], w_ref[...], _DN_XWT, preferred_element_type=jnp.float32)
    # Dense-output dropout -> identity (inference).
    h = y + b_ref[...].astype(jnp.float32) + res_ref[...].astype(jnp.float32)
    # Single-pass biased mean/variance (TF/BERT-style LayerNorm, eps inside sqrt).
    mean = jnp.mean(h, axis=-1, keepdims=True)
    mean_sq = jnp.mean(h * h, axis=-1, keepdims=True)
    var = mean_sq - mean * mean
    inv = lax.rsqrt(var + eps)                   # rsqrt on the EUP instead of sqrt + divide
    normed = (h - mean) * inv
    out = gamma_ref[...].astype(jnp.float32) * normed + beta_ref[...].astype(jnp.float32)
    o_ref[...] = out.astype(o_ref.dtype)


def bert_attention(hidden_states, attention_mask, params, *, num_heads, eps=1e-12):
    """hidden_states: [B, S, H]; attention_mask: [B, S] additive mask; weights in PyTorch [out, in]."""
    B, S, H = hidden_states.shape
    assert H % num_heads == 0
    dh = H // num_heads
    M = B * S
    dtype = hidden_states.dtype
    itemsize = jnp.dtype(dtype).itemsize

    # Row tile: cap at 512 rows so double-buffered tiles + resident weights fit v7x's 64 MiB VMEM.
    TILE_M = M if M <= 512 else 512
    grid_m = pl.cdiv(M, TILE_M)

    x2 = hidden_states.reshape(M, H)

    row_spec = pl.BlockSpec((TILE_M, H), lambda i: (i, 0))
    w_spec = pl.BlockSpec((H, H), lambda i: (0, 0))        # constant index -> resident in VMEM
    vec_spec = pl.BlockSpec((1, H), lambda i: (0, 0))

    # ---- fused Q/K/V projection ---------------------------------------------------------------
    q2, k2, v2 = pl.pallas_call(
        qkv_proj_kernel,
        out_shape=[jax.ShapeDtypeStruct((M, H), dtype)] * 3,
        grid=(grid_m,),
        in_specs=[row_spec, w_spec, w_spec, w_spec, vec_spec, vec_spec, vec_spec],
        out_specs=[row_spec, row_spec, row_spec],
        compiler_params=pltpu.CompilerParams(dimension_semantics=("parallel",)),
        cost_estimate=pl.CostEstimate(
            flops=6 * M * H * H,
            transcendentals=0,
            bytes_accessed=(4 * M * H + 3 * H * H + 3 * H) * itemsize),
    )(x2, params["wq"], params["wk"], params["wv"],
      params["bq"].reshape(1, H), params["bk"].reshape(1, H), params["bv"].reshape(1, H))

    def to_heads(t):
        return t.reshape(B, S, num_heads, dh).transpose(0, 2, 1, 3)

    q4, k4, v4 = to_heads(q2), to_heads(k2), to_heads(v2)
    mask3 = attention_mask.reshape(B, 1, S)

    head_spec = pl.BlockSpec((1, 1, S, dh), lambda b, h: (b, h, 0, 0))
    mask_spec = pl.BlockSpec((1, 1, S), lambda b, h: (b, 0, 0))

    # ---- per-(batch, head) attention core -----------------------------------------------------
    ctx4 = pl.pallas_call(
        functools.partial(attention_kernel, scale=1.0 / math.sqrt(dh)),
        out_shape=jax.ShapeDtypeStruct((B, num_heads, S, dh), dtype),
        grid=(B, num_heads),
        in_specs=[head_spec, head_spec, head_spec, mask_spec],
        out_specs=head_spec,
        compiler_params=pltpu.CompilerParams(dimension_semantics=("parallel", "parallel")),
        cost_estimate=pl.CostEstimate(
            flops=4 * B * num_heads * S * S * dh,
            transcendentals=B * num_heads * S * S,
            bytes_accessed=(4 * B * num_heads * S * dh + B * S) * itemsize),
    )(q4, k4, v4, mask3)

    ctx2 = ctx4.transpose(0, 2, 1, 3).reshape(M, H)

    # ---- fused dense + residual + LayerNorm (BertSelfOutput) ----------------------------------
    out2 = pl.pallas_call(
        functools.partial(self_output_kernel, eps=eps),
        out_shape=jax.ShapeDtypeStruct((M, H), dtype),
        grid=(grid_m,),
        in_specs=[row_spec, row_spec, w_spec, vec_spec, vec_spec, vec_spec],
        out_specs=row_spec,
        compiler_params=pltpu.CompilerParams(dimension_semantics=("parallel",)),
        cost_estimate=pl.CostEstimate(
            flops=2 * M * H * H + 10 * M * H,
            transcendentals=M,
            bytes_accessed=(3 * M * H + H * H + 4 * H) * itemsize),
    )(ctx2, x2, params["wo"], params["bo"].reshape(1, H),
      params["gamma"].reshape(1, H), params["beta"].reshape(1, H))

    return out2.reshape(B, S, H)


def reference(hidden_states, attention_mask, params, *, num_heads, eps=1e-12):
    B, S, H = hidden_states.shape
    dh = H // num_heads
    q = jnp.einsum("bsh,oh->bso", hidden_states, params["wq"]) + params["bq"]
    k = jnp.einsum("bsh,oh->bso", hidden_states, params["wk"]) + params["bk"]
    v = jnp.einsum("bsh,oh->bso", hidden_states, params["wv"]) + params["bv"]

    def to_heads(t):
        return t.reshape(B, S, num_heads, dh).transpose(0, 2, 1, 3)

    qh, kh, vh = to_heads(q), to_heads(k), to_heads(v)
    scores = jnp.einsum("bhqd,bhkd->bhqk", qh, kh) / math.sqrt(dh)
    scores = scores + attention_mask[:, None, None, :]
    probs = jax.nn.softmax(scores, axis=-1)
    ctx = jnp.einsum("bhqk,bhkd->bhqd", probs, vh)
    ctx = ctx.transpose(0, 2, 1, 3).reshape(B, S, H)

    y = jnp.einsum("bsh,oh->bso", ctx, params["wo"]) + params["bo"]
    h = y + hidden_states
    u = jnp.mean(h, axis=-1, keepdims=True)
    s = jnp.mean((h - u) ** 2, axis=-1, keepdims=True)
    return params["gamma"] * ((h - u) / jnp.sqrt(s + eps)) + params["beta"]


if __name__ == "__main__":
    key = jax.random.PRNGKey(0)
    B, S, H, NH = 2, 8, 32, 4
    ks = jax.random.split(key, 10)

    hidden_states = jax.random.normal(ks[0], (B, S, H), dtype=jnp.float32)
    # Additive BERT-style mask over key positions (0 = keep, -10000 = masked out).
    attention_mask = jnp.zeros((B, S), dtype=jnp.float32)
    attention_mask = attention_mask.at[1, S - 2:].set(-10000.0)

    bound = 1.0 / math.sqrt(H)

    def linear(kw, kb):
        w = jax.random.uniform(kw, (H, H), minval=-bound, maxval=bound, dtype=jnp.float32)
        b = jax.random.uniform(kb, (H,), minval=-bound, maxval=bound, dtype=jnp.float32)
        return w, b   # PyTorch nn.Linear layout: [out, in]

    wq, bq = linear(ks[1], ks[2])
    wk, bk = linear(ks[3], ks[4])
    wv, bv = linear(ks[5], ks[6])
    wo, bo = linear(ks[7], ks[8])

    params = dict(wq=wq, bq=bq, wk=wk, bk=bk, wv=wv, bv=bv, wo=wo, bo=bo,
                  gamma=jnp.ones((H,), jnp.float32), beta=jnp.zeros((H,), jnp.float32))

    out = bert_attention(hidden_states, attention_mask, params, num_heads=NH)
    out = jax.block_until_ready(out)

    ref = reference(hidden_states, attention_mask, params, num_heads=NH)
    assert out.shape == (B, S, H)
    assert jnp.allclose(out, ref, atol=1e-4, rtol=1e-4), (
        f"mismatch vs reference: max abs err {jnp.max(jnp.abs(out - ref))}")

    print("KERNEL_OK")
</pallas_src>

<mosaic_0001>
module attributes {stable_mosaic.version = 11 : i64} {
  func.func @qkv_proj_kernel(%arg0: i32, %arg1: memref<16x32xf32, #tpu.memory_space<vmem>>, %arg2: memref<32x32xf32, #tpu.memory_space<vmem>>, %arg3: memref<32x32xf32, #tpu.memory_space<vmem>>, %arg4: memref<32x32xf32, #tpu.memory_space<vmem>>, %arg5: memref<1x32xf32, #tpu.memory_space<vmem>>, %arg6: memref<1x32xf32, #tpu.memory_space<vmem>>, %arg7: memref<1x32xf32, #tpu.memory_space<vmem>>, %arg8: memref<16x32xf32, #tpu.memory_space<vmem>>, %arg9: memref<16x32xf32, #tpu.memory_space<vmem>>, %arg10: memref<16x32xf32, #tpu.memory_space<vmem>>) attributes {dimension_semantics = [#tpu.dimension_semantics<parallel>], iteration_bounds = array<i64: 1>, scalar_prefetch = 0 : i64, scratch_operands = 0 : i64, tpu.core_type = #tpu.core_type<tc>, window_params = [{transform_indices = @transform_0, window_bounds = array<i64: 16, 32>}, {pipeline_mode = #tpu.pipeline_mode<synchronous>, transform_indices = @transform_1, window_bounds = array<i64: 32, 32>}, {pipeline_mode = #tpu.pipeline_mode<synchronous>, transform_indices = @transform_2, window_bounds = array<i64: 32, 32>}, {pipeline_mode = #tpu.pipeline_mode<synchronous>, transform_indices = @transform_3, window_bounds = array<i64: 32, 32>}, {pipeline_mode = #tpu.pipeline_mode<synchronous>, transform_indices = @transform_4, window_bounds = array<i64: 1, 32>}, {pipeline_mode = #tpu.pipeline_mode<synchronous>, transform_indices = @transform_5, window_bounds = array<i64: 1, 32>}, {pipeline_mode = #tpu.pipeline_mode<synchronous>, transform_indices = @transform_6, window_bounds = array<i64: 1, 32>}, {transform_indices = @transform_7, window_bounds = array<i64: 16, 32>}, {transform_indices = @transform_8, window_bounds = array<i64: 16, 32>}, {transform_indices = @transform_9, window_bounds = array<i64: 16, 32>}]} {
    %c0 = arith.constant 0 : index
    %c0_0 = arith.constant 0 : index
    %0 = vector.load %arg1[%c0, %c0_0] : memref<16x32xf32, #tpu.memory_space<vmem>>, vector<16x32xf32>
    %c0_1 = arith.constant 0 : index
    %c0_2 = arith.constant 0 : index
    %1 = vector.load %arg2[%c0_1, %c0_2] : memref<32x32xf32, #tpu.memory_space<vmem>>, vector<32x32xf32>
    %cst = arith.constant dense<0.000000e+00> : vector<16x32xf32>
    %2 = tpu.matmul %0, %1, %cst {dimension_numbers = #tpu.dot_dimension_numbers<[1], [1], [0], [0], [0, 0, 1, 0], [], []>} : vector<16x32xf32>, vector<32x32xf32>, vector<16x32xf32> -> vector<16x32xf32>
    %c0_3 = arith.constant 0 : index
    %c0_4 = arith.constant 0 : index
    %3 = vector.load %arg3[%c0_3, %c0_4] : memref<32x32xf32, #tpu.memory_space<vmem>>, vector<32x32xf32>
    %cst_5 = arith.constant dense<0.000000e+00> : vector<16x32xf32>
    %4 = tpu.matmul %0, %3, %cst_5 {dimension_numbers = #tpu.dot_dimension_numbers<[1], [1], [0], [0], [0, 0, 1, 0], [], []>} : vector<16x32xf32>, vector<32x32xf32>, vector<16x32xf32> -> vector<16x32xf32>
    %c0_6 = arith.constant 0 : index
    %c0_7 = arith.constant 0 : index
    %5 = vector.load %arg4[%c0_6, %c0_7] : memref<32x32xf32, #tpu.memory_space<vmem>>, vector<32x32xf32>
    %cst_8 = arith.constant dense<0.000000e+00> : vector<16x32xf32>
    %6 = tpu.matmul %0, %5, %cst_8 {dimension_numbers = #tpu.dot_dimension_numbers<[1], [1], [0], [0], [0, 0, 1, 0], [], []>} : vector<16x32xf32>, vector<32x32xf32>, vector<16x32xf32> -> vector<16x32xf32>
    %c0_9 = arith.constant 0 : index
    %c0_10 = arith.constant 0 : index
    %7 = vector.load %arg5[%c0_9, %c0_10] : memref<1x32xf32, #tpu.memory_space<vmem>>, vector<1x32xf32>
    %8 = vector.broadcast %7 : vector<1x32xf32> to vector<16x32xf32>
    %9 = arith.addf %2, %8 : vector<16x32xf32>
    %c0_11 = arith.constant 0 : index
    %c0_12 = arith.constant 0 : index
    %10 = vector.load %arg8[%c0_11, %c0_12] : memref<16x32xf32, #tpu.memory_space<vmem>>, vector<16x32xf32>
    tpu.vector_store %arg8[%c0_11, %c0_12], %9 {strides = array<i32>} : memref<16x32xf32, #tpu.memory_space<vmem>>, vector<16x32xf32>,
    %c0_13 = arith.constant 0 : index
    %c0_14 = arith.constant 0 : index
    %11 = vector.load %arg6[%c0_13, %c0_14] : memref<1x32xf32, #tpu.memory_space<vmem>>, vector<1x32xf32>
    %12 = vector.broadcast %11 : vector<1x32xf32> to vector<16x32xf32>
    %13 = arith.addf %4, %12 : vector<16x32xf32>
    %c0_15 = arith.constant 0 : index
    %c0_16 = arith.constant 0 : index
    %14 = vector.load %arg9[%c0_15, %c0_16] : memref<16x32xf32, #tpu.memory_space<vmem>>, vector<16x32xf32>
    tpu.vector_store %arg9[%c0_15, %c0_16], %13 {strides = array<i32>} : memref<16x32xf32, #tpu.memory_space<vmem>>, vector<16x32xf32>,
    %c0_17 = arith.constant 0 : index
    %c0_18 = arith.constant 0 : index
    %15 = vector.load %arg7[%c0_17, %c0_18] : memref<1x32xf32, #tpu.memory_space<vmem>>, vector<1x32xf32>
    %16 = vector.broadcast %15 : vector<1x32xf32> to vector<16x32xf32>
    %17 = arith.addf %6, %16 : vector<16x32xf32>
    %c0_19 = arith.constant 0 : index
    %c0_20 = arith.constant 0 : index
    %18 = vector.load %arg10[%c0_19, %c0_20] : memref<16x32xf32, #tpu.memory_space<vmem>>, vector<16x32xf32>
    tpu.vector_store %arg10[%c0_19, %c0_20], %17 {strides = array<i32>} : memref<16x32xf32, #tpu.memory_space<vmem>>, vector<16x32xf32>,
    return
  }
  func.func @transform_0(%arg0: i32) -> (i32, i32) {
    %c0_i32 = arith.constant 0 : i32
    %c0_i32_0 = arith.constant 0 : i32
    return %arg0, %c0_i32 : i32, i32
  }
  func.func @transform_1(%arg0: i32) -> (i32, i32) {
    %c0_i32 = arith.constant 0 : i32
    %c0_i32_0 = arith.constant 0 : i32
    %c0_i32_1 = arith.constant 0 : i32
    return %c0_i32, %c0_i32_0 : i32, i32
  }
  func.func @transform_2(%arg0: i32) -> (i32, i32) {
    %c0_i32 = arith.constant 0 : i32
    %c0_i32_0 = arith.constant 0 : i32
    %c0_i32_1 = arith.constant 0 : i32
    return %c0_i32, %c0_i32_0 : i32, i32
  }
  func.func @transform_3(%arg0: i32) -> (i32, i32) {
    %c0_i32 = arith.constant 0 : i32
    %c0_i32_0 = arith.constant 0 : i32
    %c0_i32_1 = arith.constant 0 : i32
    return %c0_i32, %c0_i32_0 : i32, i32
  }
  func.func @transform_4(%arg0: i32) -> (i32, i32) {
    %c0_i32 = arith.constant 0 : i32
    %c0_i32_0 = arith.constant 0 : i32
    %c0_i32_1 = arith.constant 0 : i32
    return %c0_i32, %c0_i32_0 : i32, i32
  }
  func.func @transform_5(%arg0: i32) -> (i32, i32) {
    %c0_i32 = arith.constant 0 : i32
    %c0_i32_0 = arith.constant 0 : i32
    %c0_i32_1 = arith.constant 0 : i32
    return %c0_i32, %c0_i32_0 : i32, i32
  }
  func.func @transform_6(%arg0: i32) -> (i32, i32) {
    %c0_i32 = arith.constant 0 : i32
    %c0_i32_0 = arith.constant 0 : i32
    %c0_i32_1 = arith.constant 0 : i32
    return %c0_i32, %c0_i32_0 : i32, i32
  }
  func.func @transform_7(%arg0: i32) -> (i32, i32) {
    %c0_i32 = arith.constant 0 : i32
    %c0_i32_0 = arith.constant 0 : i32
    return %arg0, %c0_i32 : i32, i32
  }
  func.func @transform_8(%arg0: i32) -> (i32, i32) {
    %c0_i32 = arith.constant 0 : i32
    %c0_i32_0 = arith.constant 0 : i32
    return %arg0, %c0_i32 : i32, i32
  }
  func.func @transform_9(%arg0: i32) -> (i32, i32) {
    %c0_i32 = arith.constant 0 : i32
    %c0_i32_0 = arith.constant 0 : i32
    return %arg0, %c0_i32 : i32, i32
  }
}

</mosaic_0001>

<bundles_post_ra>
// kernel: tpu_custom_call.1
= control target key start
LH: loop header
LB: loop body
LE: loop exit
PB: predicated region body
PF: predicated region fallthrough
CT: control target
= control target key end

     0   :  { %15 = vsyncpa [#allocation3], 0  ;;  %s962_s0 = inlined_call_operand.hbm [shape: f32[16,32], index: 0, kind: input, shape index: {}]   ;;  %s963_s1 = inlined_call_operand.hbm [shape: f32[32,32], index: 1, kind: input, shape index: {}]   ;;  %s964_s2 = inlined_call_operand.hbm [shape: f32[32,32], index: 2, kind: input, shape index: {}]   ;;  %s965_s3 = inlined_call_operand.hbm [shape: f32[32,32], index: 3, kind: input, shape index: {}]   ;;  %s966_s4 = inlined_call_operand.vmem [shape: f32[1,32], index: 4, kind: input, shape index: {}]   ;;  %s967_s5 = inlined_call_operand.vmem [shape: f32[1,32], index: 5, kind: input, shape index: {}]   ;;  %s968_s6 = inlined_call_operand.vmem [shape: f32[1,32], index: 6, kind: input, shape index: {}]   ;;  %s969_s7 = inlined_call_operand.hbm [shape: f32[16,32], index: 7, kind: output, shape index: {0}]   ;;  %s970_s8 = inlined_call_operand.hbm [shape: f32[16,32], index: 8, kind: output, shape index: {1}]   ;;  %s971_s9 = inlined_call_operand.hbm [shape: f32[16,32], index: 9, kind: output, shape index: {2}]  }
   0x1   :  { %16 = vsyncpa [#allocation6], 0 }
   0x2   :  { %17 = vsyncpa [#allocation9], 0 }
   0x3   :  { %18 = vsyncpa [#allocation4], 0 }
   0x4   :  { %19 = vsyncpa [#allocation12], 0  ;;  %s726_s30 = smov [#allocation5]   ;;  %s727_s11 = smov [#allocation2]  }
   0x5   :  { %s37_s10 = sshll.u32 %s726_s30, 4  ;;  %s25_s12 = sshll.u32 %s727_s11, 4  ;;  %s38_s10 = int_to_ptr.vmem [resolvable:$true] %s37_s10  ;;  %s785_s12 = int_to_ptr.vmem [resolvable:$true] %s25_s12 }
   0x6   :  { %s562_s15 = scalar_lea.hbm %s963_s1, 512 }
   0x7   :  { %p563_p0 = scmp.ne.s32.totalorder %s963_s1, %s562_s15  ;;  %p566_p1 = scmp.lt.u32.totalorder %s562_s15, %s963_s1 }
   0x9   :  { %p568_p2 = pnand %p566_p1, %p563_p0 }
   0xb   :  { %571 = shalt.err (!%p568_p2)
}
   0xc   :  { %s572_s20 = scalar_lea.vmem %s38_s10, 512  ;;  %p577_p4 = scmp.lt.s32.totalorder %s38_s10, %s38_s10 }
   0xd   :  { %p573_p3 = scmp.ne.s32.totalorder %s38_s10, %s572_s20  ;;  %p578_p5 = scmp.lt.s32.totalorder %s572_s20, %s572_s20 }
   0xf   :  { %p579_p6 = por %p578_p5, %p577_p4 }
  0x11   :  { %p580_p7 = pnand %p579_p6, %p573_p3 }
  0x13   :  { %583 = shalt.err (!%p580_p7)
}
  0x14   :  { %s728_s21 = smov 128   ;;  %s729_s22 = smov 8  }
  0x15   :  { %43 = dma.hbm_to_vmem [thread:$0]  %s963_s1, 512, %s38_s10, [#allocation6], %s728_s21, %s728_s21, %s729_s22  }
  0x16   :  { %s584_s27 = scalar_lea.hbm %s962_s0, 256 }
  0x17   :  { %p585_p8 = scmp.ne.s32.totalorder %s962_s0, %s584_s27  ;;  %p588_p9 = scmp.lt.u32.totalorder %s584_s27, %s962_s0 }
  0x19   :  { %p590_p10 = pnand %p588_p9, %p585_p8 }
  0x1b   :  { %593 = shalt.err (!%p590_p10)
}
  0x1c   :  { %s594_s13 = scalar_lea.vmem %s785_s12, 256  ;;  %p599_p12 = scmp.lt.s32.totalorder %s785_s12, %s785_s12 }
  0x1d   :  { %p595_p11 = scmp.ne.s32.totalorder %s785_s12, %s594_s13  ;;  %p600_p13 = scmp.lt.s32.totalorder %s594_s13, %s594_s13 }
  0x1f   :  { %p601_p0 = por %p600_p13, %p599_p12 }
  0x21   :  { %p602_p1 = pnand %p601_p0, %p595_p11 }
  0x23   :  { %605 = shalt.err (!%p602_p1)
}
  0x24   :  { %31 = dma.hbm_to_vmem [thread:$0]  %s962_s0, 256, %s785_s12, [#allocation3], %s728_s21, %s728_s21, %s729_s22  }
  0x25   :  { %s730_s14 = smov [#allocation7]   ;;  %s731_s16 = smov [#allocation8]  }
  0x26   :  { %s49_s15 = sshll.u32 %s730_s14, 4  ;;  %s61_s17 = sshll.u32 %s731_s16, 4  ;;  %s50_s15 = int_to_ptr.vmem [resolvable:$true] %s49_s15  ;;  %s822_s17 = int_to_ptr.vmem [resolvable:$true] %s61_s17 }
  0x27   :  { %s606_s20 = scalar_lea.hbm %s964_s2, 512 }
  0x28   :  { %p607_p2 = scmp.ne.s32.totalorder %s964_s2, %s606_s20  ;;  %p610_p3 = scmp.lt.u32.totalorder %s606_s20, %s964_s2 }
  0x2a   :  { %p612_p4 = pnand %p610_p3, %p607_p2 }
  0x2c   :  { %615 = shalt.err (!%p612_p4)
}
  0x2d   :  { %s616_s0 = scalar_lea.vmem %s50_s15, 512  ;;  %p621_p6 = scmp.lt.s32.totalorder %s50_s15, %s50_s15 }
  0x2e   :  { %p617_p5 = scmp.ne.s32.totalorder %s50_s15, %s616_s0  ;;  %p622_p7 = scmp.lt.s32.totalorder %s616_s0, %s616_s0 }
  0x30   :  { %p623_p8 = por %p622_p7, %p621_p6 }
  0x32   :  { %p624_p9 = pnand %p623_p8, %p617_p5 }
  0x34   :  { %627 = shalt.err (!%p624_p9)
}
  0x35   :  { %55 = dma.hbm_to_vmem [thread:$0]  %s964_s2, 512, %s50_s15, [#allocation6], %s728_s21, %s728_s21, %s729_s22  }
  0x36   :  { %s628_s30 = scalar_lea.hbm %s965_s3, 512 }
  0x37   :  { %p629_p10 = scmp.ne.s32.totalorder %s965_s3, %s628_s30  ;;  %p632_p11 = scmp.lt.u32.totalorder %s628_s30, %s965_s3 }
  0x39   :  { %p634_p12 = pnand %p632_p11, %p629_p10 }
  0x3b   :  { %637 = shalt.err (!%p634_p12)
}
  0x3c   :  { %s638_s14 = scalar_lea.vmem %s822_s17, 512  ;;  %p643_p0 = scmp.lt.s32.totalorder %s822_s17, %s822_s17 }
  0x3d   :  { %p639_p13 = scmp.ne.s32.totalorder %s822_s17, %s638_s14  ;;  %p644_p1 = scmp.lt.s32.totalorder %s638_s14, %s638_s14 }
  0x3f   :  { %p645_p2 = por %p644_p1, %p643_p0 }
  0x41   :  { %p646_p3 = pnand %p645_p2, %p639_p13 }
  0x43   :  { %649 = shalt.err (!%p646_p3)
}
  0x44   :  { %67 = dma.hbm_to_vmem [thread:$0]  %s965_s3, 512, %s822_s17, [#allocation9], %s728_s21, %s728_s21, %s729_s22  }
  0x45   :  { %716 = dma.done.wait [#allocation3], 256  }
  0x46   :  { %717 = vsyncadd [#allocation3], 4294967040 }
  0x47   :  { %718 = dma.done.wait [#allocation6], 1024  }
  0x48   :  { %719 = vsyncadd [#allocation6], 4294966272 }
  0x49   :  { %720 = dma.done.wait [#allocation9], 512  }
  0x4a   :  { %721 = vsyncadd [#allocation9], 4294966784  ;;  %vm107_vm0 = vcmask 261120   ;;  %v88_v1 = vld [vmem:[#allocation5] sm:$0xff]  ;;  %v89_v2 = vld [vmem:[#allocation5 + $0x8] sm:$0xff]  ;;  %s732_s19 = smov [#allocation10]  }
  0x4b   :  { %vm861_vm1 = vmpackc.low %vm107_vm0, %vm107_vm0  ;;  %v90_v3 = vld [vmem:[#allocation5 + $0x10] sm:$0xff]  ;;  %v517_v4 = vpack.c.bf16 %v89_v2, %v88_v1  ;;  %v91_v5 = vld [vmem:[#allocation5 + $0x18] sm:$0xff]  ;;  %s400_s20 = sshll.u32 %s732_s19, 4  ;;  %s733_s23 = smov [#allocation11]   ;;  %s401_s20 = int_to_ptr.vmem [resolvable:$true] %s400_s20 }
  0x4c   :  { %v92_v6 = vld [vmem:[#allocation7] sm:$0xff]  ;;  %v93_v7 = vld [vmem:[#allocation7 + $0x8] sm:$0xff]  ;;  %v523_v8 = vpack.c.bf16 %v91_v5, %v90_v3  ;;  %v86_v10 = vld [vmem:[#allocation2] sm:$0xff]  ;;  %s412_s24 = sshll.u32 %s733_s23, 4  ;;  %p655_p5 = scmp.lt.s32.totalorder %s401_s20, %s401_s20  ;;  %s902_s24 = int_to_ptr.vmem [resolvable:$true] %s412_s24 }
  0x4d   :  { %v529_v9 = vpack.c.bf16 %v93_v7, %v92_v6  ;;  %519 = vmatprep.subr.msk.bf16.mxu0 %vm861_vm1, %v517_v4  ;;  %492 = vmatprep.mubr.msk.f32.mxu0 %vm107_vm0, %v86_v10  ;;  %v94_v11 = vld [vmem:[#allocation7 + $0x10] sm:$0xff]  ;;  %v95_v12 = vld [vmem:[#allocation7 + $0x18] sm:$0xff]  ;;  %v96_v14 = vld [vmem:[#allocation8] sm:$0xff] }
  0x4e   :  { %522 = vmatpush3.bf16.xpose.msk.msra.mxu0 %vm861_vm1, %v517_v4  ;;  %v535_v13 = vpack.c.bf16 %v95_v12, %v94_v11  ;;  %v97_v15 = vld [vmem:[#allocation8 + $0x8] sm:$0xff]  ;;  %503 = vmatprep.mubr.msk.f32.mxu1 %vm107_vm0, %v86_v10  ;;  %v98_v17 = vld [vmem:[#allocation8 + $0x10] sm:$0xff]  ;;  %v99_v18 = vld [vmem:[#allocation8 + $0x18] sm:$0xff] }
  0x4f   :  { %531 = vmatprep.subr.msk.bf16.mxu1 %vm861_vm1, %v529_v9  ;;  %525 = vmatprep.subr.msk.bf16.mxu0 %vm861_vm1, %v523_v8  ;;  %v541_v16 = vpack.c.bf16 %v97_v15, %v96_v14  ;;  %v87_v19 = vld [vmem:[#allocation2 + $0x8] sm:$0xff]  ;;  %v547_v20 = vpack.c.bf16 %v99_v18, %v98_v17  ;;  %v445_v21 = vld [vmem:[%s966_s4] ss:$0 sm:$0xff]  ;;  %s650_s4 = scalar_lea.vmem %s401_s20, 256 }
  0x50   :  { %534 = vmatpush3.bf16.xpose.msk.msra.mxu1 %vm861_vm1, %v529_v9  ;;  %v452_v22 = vld [vmem:[%s967_s5] ss:$0 sm:$0xff]  ;;  %p651_p4 = scmp.ne.s32.totalorder %s401_s20, %s650_s4  ;;  %p656_p6 = scmp.lt.s32.totalorder %s650_s4, %s650_s4 }
  0x51   :  { %537 = vmatprep.subr.msk.bf16.mxu1 %vm861_vm1, %v535_v13 }
  0x52   :  { %p657_p7 = por %p656_p6, %p655_p5 }
  0x54   :  { %p658_p8 = pnand %p657_p7, %p651_p4 }
  0x56   :  { %528 = vmatpush3.bf16.xpose.msk.msra.mxu0 %vm861_vm1, %v523_v8 }
  0x57   :  { %543 = vmatprep.subr.msk.bf16.mxu0 %vm861_vm1, %v541_v16 }
  0x58   :  { %540 = vmatpush3.bf16.xpose.msk.msra.mxu1 %vm861_vm1, %v535_v13 }
  0x5d   :  { %493 = vmatmul.mubr.msk.f32.vlgmr.msra.gmra.mrb[0].mxu0 %vm107_vm0, %v87_v19 }
  0x5e   :  { %546 = vmatpush3.bf16.xpose.msk.msra.mxu0 %vm861_vm1, %v541_v16  ;;  %514 = vmatprep.mubr.msk.f32.mxu0 %vm107_vm0, %v86_v10 }
  0x5f   :  { %504 = vmatmul.mubr.msk.f32.vlgmr.msra.gmra.mrb[0].mxu1 %vm107_vm0, %v87_v19  ;;  %549 = vmatprep.subr.msk.bf16.mxu0 %vm861_vm1, %v547_v20 }
  0x66   :  { %552 = vmatpush3.bf16.xpose.msk.msra.mxu0 %vm861_vm1, %v547_v20 }
  0x6d   :  { %515 = vmatmul.mubr.msk.f32.vlgmr.msra.gmra.mrb[2].mxu0 %vm107_vm0, %v87_v19 }
 0x130   :  { %v494_v23 = vpop.f32.mrb[0].mxu0 }
 0x131   :  { %v198_v24 = vadd.f32 %v494_v23, %v445_v21  ;;  %v192_v25 = vpop.f32.mrb[1].mxu0 }
 0x132   :  { %v505_v26 = vpop.f32.mrb[0].mxu1  ;;  %v193_v27 = vadd.f32 %v445_v21, %v192_v25 }
 0x133   :  { %v294_v28 = vadd.f32 %v505_v26, %v452_v22  ;;  %v288_v29 = vpop.f32.mrb[1].mxu1  ;;  %202 = vst.msk [vmem:[#allocation10 + $0x8] sm:$0xff] %vm107_vm0, %v198_v24 }
 0x134   :  { %v289_v30 = vadd.f32 %v452_v22, %v288_v29  ;;  %201 = vst.msk [vmem:[#allocation10] sm:$0xff] %vm107_vm0, %v193_v27 }
 0x135   :  { %298 = vst.msk [vmem:[#allocation11 + $0x8] sm:$0xff] %vm107_vm0, %v294_v28 }
 0x136   :  { %297 = vst.msk [vmem:[#allocation11] sm:$0xff] %vm107_vm0, %v289_v30 }
 0x137   :  { %661 = shalt.err (!%p658_p8)
}
 0x138   :  { %s662_s26 = scalar_lea.hbm %s969_s7, 256 }
 0x139   :  { %p663_p9 = scmp.ne.s32.totalorder %s969_s7, %s662_s26  ;;  %p666_p10 = scmp.lt.u32.totalorder %s662_s26, %s969_s7 }
 0x13b   :  { %p668_p11 = pnand %p666_p10, %p663_p9 }
 0x13d   :  { %671 = shalt.err (!%p668_p11)
}
 0x13e   :  { %406 = dma.vmem_to_hbm [thread:$0]  %s401_s20, 256, %s969_s7, [#allocation4], %s728_s21, %s728_s21, %s729_s22  }
 0x13f   :  { %s672_s11 = scalar_lea.vmem %s902_s24, 256  ;;  %p677_p13 = scmp.lt.s32.totalorder %s902_s24, %s902_s24 }
 0x140   :  { %p673_p12 = scmp.ne.s32.totalorder %s902_s24, %s672_s11  ;;  %p678_p0 = scmp.lt.s32.totalorder %s672_s11, %s672_s11 }
 0x142   :  { %p679_p1 = por %p678_p0, %p677_p13 }
 0x144   :  { %p680_p2 = pnand %p679_p1, %p673_p12 }
 0x146   :  { %683 = shalt.err (!%p680_p2)
}
 0x147   :  { %s684_s10 = scalar_lea.hbm %s970_s8, 256 }
 0x148   :  { %p685_p3 = scmp.ne.s32.totalorder %s970_s8, %s684_s10  ;;  %p688_p4 = scmp.lt.u32.totalorder %s684_s10, %s970_s8 }
 0x14a   :  { %p690_p5 = pnand %p688_p4, %p685_p3 }
 0x14c   :  { %693 = shalt.err (!%p690_p5)
}
 0x14d   :  { %418 = dma.vmem_to_hbm [thread:$0]  %s902_s24, 256, %s970_s8, [#allocation12], %s728_s21, %s728_s21, %s729_s22   ;;  %v516_v32 = vpop.f32.mrb[2].mxu0 }
 0x14e   :  { %v459_v31 = vld [vmem:[%s968_s6] ss:$0 sm:$0xff]  ;;  %s734_s19 = smov [#allocation13]   ;;  %v384_v34 = vpop.f32.mrb[3].mxu0 }
 0x14f   :  { %s424_s20 = sshll.u32 %s734_s19, 4  ;;  %v390_v33 = vadd.f32 %v516_v32, %v459_v31  ;;  %v385_v35 = vadd.f32 %v459_v31, %v384_v34  ;;  %s425_s20 = int_to_ptr.vmem [resolvable:$true] %s424_s20 }
 0x150   :  { %s694_s23 = scalar_lea.vmem %s425_s20, 256  ;;  %p699_p7 = scmp.lt.s32.totalorder %s425_s20, %s425_s20 }
 0x151   :  { %394 = vst.msk [vmem:[#allocation13 + $0x8] sm:$0xff] %vm107_vm0, %v390_v33  ;;  %393 = vst.msk [vmem:[#allocation13] sm:$0xff] %vm107_vm0, %v385_v35  ;;  %p695_p6 = scmp.ne.s32.totalorder %s425_s20, %s694_s23  ;;  %p700_p8 = scmp.lt.s32.totalorder %s694_s23, %s694_s23 }
 0x153   :  { %p701_p9 = por %p700_p8, %p699_p7 }
 0x155   :  { %p702_p10 = pnand %p701_p9, %p695_p6 }
 0x157   :  { %705 = shalt.err (!%p702_p10)
}
 0x158   :  { %s706_s24 = scalar_lea.hbm %s971_s9, 256 }
 0x159   :  { %p707_p11 = scmp.ne.s32.totalorder %s971_s9, %s706_s24  ;;  %p710_p12 = scmp.lt.u32.totalorder %s706_s24, %s971_s9 }
 0x15b   :  { %p712_p13 = pnand %p710_p12, %p707_p11 }
 0x15d   :  { %715 = shalt.err (!%p712_p13)
}
 0x15e   :  { %430 = dma.vmem_to_hbm [thread:$0]  %s425_s20, 256, %s971_s9, [#allocation12], %s728_s21, %s728_s21, %s729_s22  }
 0x15f   :  { %722 = dma.done.wait [#allocation4], 256  }
 0x160   :  { %723 = vsyncadd [#allocation4], 4294967040 }
 0x161   :  { %724 = dma.done.wait [#allocation12], 512  }
 0x162   :  { %725 = vsyncadd [#allocation12], 4294966784 }
 0x163   :  { %440 = vsyncpa [#allocation3], 1 }
 0x164   :  { %441 = vsyncpa [#allocation6], 1 }
 0x165   :  { %442 = vsyncpa [#allocation9], 1 }
 0x166   :  { %443 = vsyncpa [#allocation4], 1 }
 0x167   :  { %444 = vsyncpa [#allocation12], 1 }

</bundles_post_ra>
